<compile_context>
chip_gen: v7x
topology: tpu7x:2x2x1
jax: 0.10.0
libtpu: 0.0.40
codegen_flags: <defaults>
</compile_context>

<pallas_src>
import jax
import jax.numpy as jnp
from jax import lax
from jax.experimental import pallas as pl
from jax.experimental.pallas import tpu as pltpu

# ----------------------------- config ---------------------------------------
EMB = 32            # emb_size
HEADS = 4           # heads
HEAD_DIM = EMB // HEADS
FWD_EXP = 4         # forward_expansion
FF = FWD_EXP * EMB
B = 2               # batch
L = 8               # seq len
EPS = 1e-5          # nn.LayerNorm default

# rows of the packed (8, 128) parameter slab
ROW_BF1, ROW_BO, ROW_G1, ROW_BE1, ROW_G2, ROW_BE2, ROW_BF2 = 0, 1, 2, 3, 4, 5, 6


def _layer_norm(x, gamma, beta):
    mu = jnp.mean(x, axis=-1, keepdims=True)
    var = jnp.mean((x - mu) ** 2, axis=-1, keepdims=True)
    return (x - mu) * lax.rsqrt(var + EPS) * gamma + beta


# -------------------- fused kernel (one grid point per batch element) --------
def fused_block_kernel(qkv_ref, qres_ref, bias_ref,
                       wqkv_ref, wo_ref, w1_ref, w2_ref, slab_ref,
                       o_ref, head_scr):
    H, d, Lq, E = HEADS, HEAD_DIM, L, EMB

    # ---- fused Q/K/V projection: one (H*L, 3d) x (3d, 3d) matmul.
    # 1/sqrt(head_dim) is pre-folded into the q block of the block-diag weight.
    proj = jnp.dot(qkv_ref[...], wqkv_ref[...], preferred_element_type=jnp.float32)
    qp = proj[:, 0:d].reshape(H, Lq, d)
    kp = proj[:, d:2 * d].reshape(H, Lq, d)
    vp = proj[:, 2 * d:3 * d].reshape(H, Lq, d)

    # ---- energies for all heads at once; additive mask bias (0 / -1e20) from wrapper
    energy = jnp.einsum('hqd,hkd->hqk', qp, kp, preferred_element_type=jnp.float32)
    energy = energy + bias_ref[...][None, :, :]

    # ---- softmax over keys (EUP reciprocal -> free slot)
    energy = energy - jnp.max(energy, axis=-1, keepdims=True)
    p = jnp.exp(energy)
    p = p * pl.reciprocal(jnp.sum(p, axis=-1, keepdims=True), approx=True)

    # ---- attention output for all heads at once
    out_h = jnp.einsum('hqk,hkd->hqd', p, vp, preferred_element_type=jnp.float32)

    # ---- torch's flat head-concat reshape out.reshape(B, L, H*d):
    #   out_cat[l, c*d:(c+1)*d] = out_h.reshape(H*L, d)[l*H + c, :]
    # Implemented as 4 stride-H sublane loads from a small VMEM scratch
    # (replaces the previous one-hot MXU gather).
    head_scr[...] = out_h.reshape(H * Lq, d)
    out_cat = jnp.concatenate(
        [head_scr[pl.ds(c, Lq, stride=H), :] for c in range(H)], axis=-1)   # (L, E)

    # ---- packed bias / layernorm parameters (single lane-dense slab)
    slab = slab_ref[...]
    bf1 = slab[ROW_BF1:ROW_BF1 + 1, :FF]
    bo = slab[ROW_BO:ROW_BO + 1, :E]
    g1 = slab[ROW_G1:ROW_G1 + 1, :E]
    be1 = slab[ROW_BE1:ROW_BE1 + 1, :E]
    g2 = slab[ROW_G2:ROW_G2 + 1, :E]
    be2 = slab[ROW_BE2:ROW_BE2 + 1, :E]
    bf2 = slab[ROW_BF2:ROW_BF2 + 1, :E]

    # ---- fc_out, residual + LayerNorm1 (dropout == identity at inference)
    y = jnp.dot(out_cat, wo_ref[...], preferred_element_type=jnp.float32) + bo
    x1 = _layer_norm(y + qres_ref[...], g1, be1)

    # ---- feed forward: Linear -> ReLU -> Linear
    hdn = jnp.maximum(jnp.dot(x1, w1_ref[...], preferred_element_type=jnp.float32) + bf1, 0.0)
    f = jnp.dot(hdn, w2_ref[...], preferred_element_type=jnp.float32) + bf2

    # ---- residual + LayerNorm2
    o_ref[...] = _layer_norm(f + x1, g2, be2)


# ------------------------------ wrapper --------------------------------------
@jax.jit
def transformer_block(value, key, query, mask, params):
    Bq, Lq, E = query.shape
    H, d = HEADS, HEAD_DIM

    # torch's flat (B, heads, L, head_dim) split of v/k/q, concatenated along lanes
    q64 = query.reshape(Bq, H * Lq, d)
    k64 = key.reshape(Bq, H * Lq, d)
    v64 = value.reshape(Bq, H * Lq, d)
    qkv = jnp.concatenate([q64, k64, v64], axis=-1)                 # (B, H*L, 3d)

    # additive mask bias: 0 where visible, -1e20 where mask == 0 (dtype-robust)
    mask_bias = jnp.where(mask == 0, jnp.float32(-1e20),
                          jnp.float32(0.0)).reshape(Bq, Lq, Lq)

    # block-diag QKV weight, pre-transposed to (in, out); 1/sqrt(d) folded into q
    z = jnp.zeros((d, d), jnp.float32)
    wq_t = params["Wq"].T * jnp.float32(1.0 / (d ** 0.5))
    wk_t = params["Wk"].T
    wv_t = params["Wv"].T
    wqkv = jnp.concatenate([
        jnp.concatenate([wq_t, z, z], axis=1),
        jnp.concatenate([z, wk_t, z], axis=1),
        jnp.concatenate([z, z, wv_t], axis=1)], axis=0)             # (3d, 3d)

    # remaining weights transposed once, outside the kernel
    wo_t = params["Wo"].T                                           # (E, E)
    w1_t = params["W1"].T                                           # (E, FF)
    w2_t = params["W2"].T                                           # (FF, E)

    # single lane-dense (8, 128) slab for every small vector parameter
    slab = jnp.zeros((8, 128), jnp.float32)
    slab = slab.at[ROW_BF1, :FF].set(params["bf1"])
    slab = slab.at[ROW_BO, :E].set(params["bo"])
    slab = slab.at[ROW_G1, :E].set(params["g1"])
    slab = slab.at[ROW_BE1, :E].set(params["be1"])
    slab = slab.at[ROW_G2, :E].set(params["g2"])
    slab = slab.at[ROW_BE2, :E].set(params["be2"])
    slab = slab.at[ROW_BF2, :E].set(params["bf2"])

    return pl.pallas_call(
        fused_block_kernel,
        out_shape=jax.ShapeDtypeStruct((Bq, Lq, E), jnp.float32),
        grid_spec=pltpu.PrefetchScalarGridSpec(
            num_scalar_prefetch=0,
            grid=(Bq,),                                             # parallel over batch
            in_specs=[
                pl.BlockSpec((None, H * Lq, 3 * d), lambda b: (b, 0, 0)),  # qkv
                pl.BlockSpec((None, Lq, E), lambda b: (b, 0, 0)),          # residual q
                pl.BlockSpec((None, Lq, Lq), lambda b: (b, 0, 0)),         # mask bias
                pl.BlockSpec((3 * d, 3 * d), lambda b: (0, 0)),            # wqkv
                pl.BlockSpec((E, E), lambda b: (0, 0)),                    # wo^T
                pl.BlockSpec((E, FF), lambda b: (0, 0)),                   # w1^T
                pl.BlockSpec((FF, E), lambda b: (0, 0)),                   # w2^T
                pl.BlockSpec((8, 128), lambda b: (0, 0)),                  # param slab
            ],
            out_specs=pl.BlockSpec((None, Lq, E), lambda b: (b, 0, 0)),
            scratch_shapes=[pltpu.VMEM((H * Lq, d), jnp.float32)],
        ),
        compiler_params=pltpu.CompilerParams(
            dimension_semantics=("parallel",)),
    )(qkv, query, mask_bias, wqkv, wo_t, w1_t, w2_t, slab)


# ---------------------- plain-JAX reference (torch semantics) ----------------
def reference_forward(value, key, query, mask, params):
    Bq, Lq, E = query.shape
    H, d = HEADS, HEAD_DIM
    v = value.reshape(Bq, H, Lq, d)
    k = key.reshape(Bq, H, Lq, d)
    q = query.reshape(Bq, H, Lq, d)
    v = jnp.einsum('bhld,ed->bhle', v, params["Wv"])
    k = jnp.einsum('bhld,ed->bhle', k, params["Wk"])
    q = jnp.einsum('bhld,ed->bhle', q, params["Wq"])
    energy = jnp.einsum('bhqd,bhkd->bhqk', q, k)
    energy = jnp.where(mask == 0, jnp.float32(-1e20), energy)
    att = jax.nn.softmax(energy / (d ** 0.5), axis=-1)
    out = jnp.einsum('bhqk,bhkd->bhqd', att, v)
    out = out.reshape(Bq, Lq, H * d)                      # torch's flat-order reshape
    out = out @ params["Wo"].T + params["bo"]
    x1 = _layer_norm(out + query, params["g1"], params["be1"])
    fwd = jnp.maximum(x1 @ params["W1"].T + params["bf1"], 0.0) @ params["W2"].T + params["bf2"]
    return _layer_norm(fwd + x1, params["g2"], params["be2"])


# --------------------------- param init (deterministic) ----------------------
def init_params(rng):
    keys = jax.random.split(rng, 8)
    s = 0.1
    return {
        # attention projections (torch Linear weight layout: (out, in))
        "Wq": s * jax.random.normal(keys[0], (HEAD_DIM, HEAD_DIM), jnp.float32),
        "Wk": s * jax.random.normal(keys[1], (HEAD_DIM, HEAD_DIM), jnp.float32),
        "Wv": s * jax.random.normal(keys[2], (HEAD_DIM, HEAD_DIM), jnp.float32),
        "Wo": s * jax.random.normal(keys[3], (EMB, EMB), jnp.float32),
        "bo": jnp.zeros((EMB,), jnp.float32),
        # layer norms
        "g1": jnp.ones((EMB,), jnp.float32),
        "be1": jnp.zeros((EMB,), jnp.float32),
        "g2": jnp.ones((EMB,), jnp.float32),
        "be2": jnp.zeros((EMB,), jnp.float32),
        # feed forward
        "W1": s * jax.random.normal(keys[4], (FF, EMB), jnp.float32),
        "bf1": s * jax.random.normal(keys[5], (FF,), jnp.float32),
        "W2": s * jax.random.normal(keys[6], (EMB, FF), jnp.float32),
        "bf2": s * jax.random.normal(keys[7], (EMB,), jnp.float32),
    }


if __name__ == "__main__":
    root = jax.random.PRNGKey(0)
    k_v, k_k, k_q, k_p = jax.random.split(root, 4)

    value = jax.random.normal(k_v, (B, L, EMB), jnp.float32)
    key = jax.random.normal(k_k, (B, L, EMB), jnp.float32)
    query = jax.random.normal(k_q, (B, L, EMB), jnp.float32)
    # causal-style 0/1 mask, broadcast over heads at (B, 1, L, L)
    mask = jnp.tril(jnp.ones((L, L), jnp.float32))[None, None, :, :]
    mask = jnp.broadcast_to(mask, (B, 1, L, L))

    params = init_params(k_p)

    out = transformer_block(value, key, query, mask, params)
    jax.block_until_ready(out)
    assert out.shape == (B, L, EMB)

    # Sanity check against a plain-JAX reference of the same torch semantics
    # (loose tolerance: approx reciprocal + default-precision MXU matmuls).
    ref = reference_forward(value, key, query, mask, params)
    err = float(jnp.max(jnp.abs(out - ref)))
    assert err < 5e-2, f"max abs err {err}"

    print("KERNEL_OK")
</pallas_src>

<mosaic_0001>
module attributes {stable_mosaic.version = 11 : i64} {
  func.func @fused_block_kernel(%arg0: i32, %arg1: memref<1x32x24xf32, #tpu.memory_space<vmem>>, %arg2: memref<1x8x32xf32, #tpu.memory_space<vmem>>, %arg3: memref<1x8x8xf32, #tpu.memory_space<vmem>>, %arg4: memref<24x24xf32, #tpu.memory_space<vmem>>, %arg5: memref<32x32xf32, #tpu.memory_space<vmem>>, %arg6: memref<32x128xf32, #tpu.memory_space<vmem>>, %arg7: memref<128x32xf32, #tpu.memory_space<vmem>>, %arg8: memref<8x128xf32, #tpu.memory_space<vmem>>, %arg9: memref<1x8x32xf32, #tpu.memory_space<vmem>>, %arg10: memref<32x8xf32, #tpu.memory_space<vmem>>) attributes {dimension_semantics = [#tpu.dimension_semantics<parallel>], iteration_bounds = array<i64: 2>, scalar_prefetch = 0 : i64, scratch_operands = 1 : i64, tpu.core_type = #tpu.core_type<tc>, window_params = [{transform_indices = @transform_0, window_bounds = array<i64: 1, 32, 24>}, {transform_indices = @transform_1, window_bounds = array<i64: 1, 8, 32>}, {transform_indices = @transform_2, window_bounds = array<i64: 1, 8, 8>}, {pipeline_mode = #tpu.pipeline_mode<synchronous>, transform_indices = @transform_3, window_bounds = array<i64: 24, 24>}, {pipeline_mode = #tpu.pipeline_mode<synchronous>, transform_indices = @transform_4, window_bounds = array<i64: 32, 32>}, {pipeline_mode = #tpu.pipeline_mode<synchronous>, transform_indices = @transform_5, window_bounds = array<i64: 32, 128>}, {pipeline_mode = #tpu.pipeline_mode<synchronous>, transform_indices = @transform_6, window_bounds = array<i64: 128, 32>}, {pipeline_mode = #tpu.pipeline_mode<synchronous>, transform_indices = @transform_7, window_bounds = array<i64: 8, 128>}, {transform_indices = @transform_8, window_bounds = array<i64: 1, 8, 32>}]} {
    %c0 = arith.constant 0 : index
    %c0_0 = arith.constant 0 : index
    %c0_1 = arith.constant 0 : index
    %0 = vector.load %arg1[%c0, %c0_0, %c0_1] : memref<1x32x24xf32, #tpu.memory_space<vmem>>, vector<1x32x24xf32>
    %1 = vector.shape_cast %0 : vector<1x32x24xf32> to vector<32x24xf32>
    %c0_2 = arith.constant 0 : index
    %c0_3 = arith.constant 0 : index
    %2 = vector.load %arg4[%c0_2, %c0_3] : memref<24x24xf32, #tpu.memory_space<vmem>>, vector<24x24xf32>
    %cst = arith.constant dense<0.000000e+00> : vector<32x24xf32>
    %3 = tpu.matmul %1, %2, %cst {dimension_numbers = #tpu.dot_dimension_numbers<[1], [0], [0], [1], [0, 0, 1, 1], [], []>} : vector<32x24xf32>, vector<24x24xf32>, vector<32x24xf32> -> vector<32x24xf32>
    %4 = vector.extract_strided_slice %3 {offsets = [0, 0], sizes = [32, 8], strides = [1, 1]} : vector<32x24xf32> to vector<32x8xf32>
    %5 = vector.shape_cast %4 : vector<32x8xf32> to vector<4x8x8xf32>
    %6 = vector.extract_strided_slice %3 {offsets = [0, 8], sizes = [32, 8], strides = [1, 1]} : vector<32x24xf32> to vector<32x8xf32>
    %7 = vector.shape_cast %6 : vector<32x8xf32> to vector<4x8x8xf32>
    %8 = vector.extract_strided_slice %3 {offsets = [0, 16], sizes = [32, 8], strides = [1, 1]} : vector<32x24xf32> to vector<32x8xf32>
    %9 = vector.shape_cast %8 : vector<32x8xf32> to vector<4x8x8xf32>
    "tpu.trace_start"() <{level = 10 : i32, message = "hqd,hkd->hqk"}> : () -> ()
    %cst_4 = arith.constant dense<0.000000e+00> : vector<4x8x8xf32>
    %10 = tpu.matmul %5, %7, %cst_4 {dimension_numbers = #tpu.dot_dimension_numbers<[2], [2], [1], [1], [0, 0, 0, 1, 1, 1], [0], [0]>} : vector<4x8x8xf32>, vector<4x8x8xf32>, vector<4x8x8xf32> -> vector<4x8x8xf32>
    "tpu.trace_stop"() : () -> ()
    %c0_5 = arith.constant 0 : index
    %c0_6 = arith.constant 0 : index
    %c0_7 = arith.constant 0 : index
    %11 = vector.load %arg3[%c0_5, %c0_6, %c0_7] : memref<1x8x8xf32, #tpu.memory_space<vmem>>, vector<1x8x8xf32>
    %12 = vector.shape_cast %11 : vector<1x8x8xf32> to vector<8x8xf32>
    %13 = vector.shape_cast %12 : vector<8x8xf32> to vector<1x8x8xf32>
    %14 = vector.broadcast %13 : vector<1x8x8xf32> to vector<4x8x8xf32>
    %15 = arith.addf %10, %14 : vector<4x8x8xf32>
    %cst_8 = arith.constant dense<0xFF800000> : vector<4x8xf32>
    %16 = vector.multi_reduction <maximumf>, %15, %cst_8 [2] : vector<4x8x8xf32> to vector<4x8xf32>
    %17 = vector.shape_cast %16 : vector<4x8xf32> to vector<4x8x1xf32>
    %18 = vector.broadcast %17 : vector<4x8x1xf32> to vector<4x8x8xf32>
    %19 = arith.subf %15, %18 : vector<4x8x8xf32>
    %20 = math.exp %19 : vector<4x8x8xf32>
    %cst_9 = arith.constant dense<0.000000e+00> : vector<4x8xf32>
    %21 = vector.multi_reduction <add>, %20, %cst_9 [2] : vector<4x8x8xf32> to vector<4x8xf32>
    %22 = vector.shape_cast %21 : vector<4x8xf32> to vector<4x8x1xf32>
    %23 = tpu.reciprocal %22 {approx = true} : vector<4x8x1xf32> -> vector<4x8x1xf32>
    %24 = vector.broadcast %23 : vector<4x8x1xf32> to vector<4x8x8xf32>
    %25 = arith.mulf %20, %24 : vector<4x8x8xf32>
    "tpu.trace_start"() <{level = 10 : i32, message = "hqk,hkd->hqd"}> : () -> ()
    %cst_10 = arith.constant dense<0.000000e+00> : vector<4x8x8xf32>
    %26 = tpu.matmul %25, %9, %cst_10 {dimension_numbers = #tpu.dot_dimension_numbers<[2], [1], [1], [2], [0, 0, 0, 1, 1, 2], [0], [0]>} : vector<4x8x8xf32>, vector<4x8x8xf32>, vector<4x8x8xf32> -> vector<4x8x8xf32>
    "tpu.trace_stop"() : () -> ()
    %27 = vector.shape_cast %26 : vector<4x8x8xf32> to vector<32x8xf32>
    %c0_11 = arith.constant 0 : index
    %c0_12 = arith.constant 0 : index
    %28 = vector.load %arg10[%c0_11, %c0_12] : memref<32x8xf32, #tpu.memory_space<vmem>>, vector<32x8xf32>
    tpu.vector_store %arg10[%c0_11, %c0_12], %27 {strides = array<i32>} : memref<32x8xf32, #tpu.memory_space<vmem>>, vector<32x8xf32>,
    %c0_13 = arith.constant 0 : index
    %c0_14 = arith.constant 0 : index
    %29 = tpu.strided_load %arg10[%c0_13, %c0_14] {strides = array<i32: 4, 1>} : memref<32x8xf32, #tpu.memory_space<vmem>>, vector<8x8xf32>
    %c1 = arith.constant 1 : index
    %c0_15 = arith.constant 0 : index
    %30 = tpu.strided_load %arg10[%c1, %c0_15] {strides = array<i32: 4, 1>} : memref<32x8xf32, #tpu.memory_space<vmem>>, vector<8x8xf32>
    %c2 = arith.constant 2 : index
    %c0_16 = arith.constant 0 : index
    %31 = tpu.strided_load %arg10[%c2, %c0_16] {strides = array<i32: 4, 1>} : memref<32x8xf32, #tpu.memory_space<vmem>>, vector<8x8xf32>
    %c3 = arith.constant 3 : index
    %c0_17 = arith.constant 0 : index
    %32 = tpu.strided_load %arg10[%c3, %c0_17] {strides = array<i32: 4, 1>} : memref<32x8xf32, #tpu.memory_space<vmem>>, vector<8x8xf32>
    %33 = tpu.concatenate %29, %30, %31, %32 in 1 : vector<8x8xf32>, vector<8x8xf32>, vector<8x8xf32>, vector<8x8xf32> -> vector<8x32xf32>
    %c0_18 = arith.constant 0 : index
    %c0_19 = arith.constant 0 : index
    %34 = vector.load %arg8[%c0_18, %c0_19] : memref<8x128xf32, #tpu.memory_space<vmem>>, vector<8x128xf32>
    %35 = vector.extract_strided_slice %34 {offsets = [0, 0], sizes = [1, 128], strides = [1, 1]} : vector<8x128xf32> to vector<1x128xf32>
    %36 = vector.extract_strided_slice %34 {offsets = [1, 0], sizes = [1, 32], strides = [1, 1]} : vector<8x128xf32> to vector<1x32xf32>
    %37 = vector.extract_strided_slice %34 {offsets = [2, 0], sizes = [1, 32], strides = [1, 1]} : vector<8x128xf32> to vector<1x32xf32>
    %38 = vector.extract_strided_slice %34 {offsets = [3, 0], sizes = [1, 32], strides = [1, 1]} : vector<8x128xf32> to vector<1x32xf32>
    %39 = vector.extract_strided_slice %34 {offsets = [4, 0], sizes = [1, 32], strides = [1, 1]} : vector<8x128xf32> to vector<1x32xf32>
    %40 = vector.extract_strided_slice %34 {offsets = [5, 0], sizes = [1, 32], strides = [1, 1]} : vector<8x128xf32> to vector<1x32xf32>
    %41 = vector.extract_strided_slice %34 {offsets = [6, 0], sizes = [1, 32], strides = [1, 1]} : vector<8x128xf32> to vector<1x32xf32>
    %c0_20 = arith.constant 0 : index
    %c0_21 = arith.constant 0 : index
    %42 = vector.load %arg5[%c0_20, %c0_21] : memref<32x32xf32, #tpu.memory_space<vmem>>, vector<32x32xf32>
    %cst_22 = arith.constant dense<0.000000e+00> : vector<8x32xf32>
    %43 = tpu.matmul %33, %42, %cst_22 {dimension_numbers = #tpu.dot_dimension_numbers<[1], [0], [0], [1], [0, 0, 1, 1], [], []>} : vector<8x32xf32>, vector<32x32xf32>, vector<8x32xf32> -> vector<8x32xf32>
    %44 = vector.broadcast %36 : vector<1x32xf32> to vector<8x32xf32>
    %45 = arith.addf %43, %44 : vector<8x32xf32>
    %c0_23 = arith.constant 0 : index
    %c0_24 = arith.constant 0 : index
    %c0_25 = arith.constant 0 : index
    %46 = vector.load %arg2[%c0_23, %c0_24, %c0_25] : memref<1x8x32xf32, #tpu.memory_space<vmem>>, vector<1x8x32xf32>
    %47 = vector.shape_cast %46 : vector<1x8x32xf32> to vector<8x32xf32>
    %48 = arith.addf %45, %47 : vector<8x32xf32>
    %cst_26 = arith.constant dense<0.000000e+00> : vector<8xf32>
    %49 = vector.multi_reduction <add>, %48, %cst_26 [1] : vector<8x32xf32> to vector<8xf32>
    %50 = vector.shape_cast %49 : vector<8xf32> to vector<8x1xf32>
    %cst_27 = arith.constant 3.200000e+01 : f32
    %51 = vector.broadcast %cst_27 : f32 to vector<8x1xf32>
    %52 = arith.divf %50, %51 : vector<8x1xf32>
    %53 = vector.broadcast %52 : vector<8x1xf32> to vector<8x32xf32>
    %54 = arith.subf %48, %53 : vector<8x32xf32>
    %55 = arith.mulf %54, %54 : vector<8x32xf32>
    %cst_28 = arith.constant dense<0.000000e+00> : vector<8xf32>
    %56 = vector.multi_reduction <add>, %55, %cst_28 [1] : vector<8x32xf32> to vector<8xf32>
    %57 = vector.shape_cast %56 : vector<8xf32> to vector<8x1xf32>
    %cst_29 = arith.constant 3.200000e+01 : f32
    %58 = vector.broadcast %cst_29 : f32 to vector<8x1xf32>
    %59 = arith.divf %57, %58 : vector<8x1xf32>
    %60 = vector.broadcast %52 : vector<8x1xf32> to vector<8x32xf32>
    %61 = arith.subf %48, %60 : vector<8x32xf32>
    %cst_30 = arith.constant 9.99999974E-6 : f32
    %62 = vector.broadcast %cst_30 : f32 to vector<8x1xf32>
    %63 = arith.addf %59, %62 : vector<8x1xf32>
    %64 = math.rsqrt %63 : vector<8x1xf32>
    %65 = vector.broadcast %64 : vector<8x1xf32> to vector<8x32xf32>
    %66 = arith.mulf %61, %65 : vector<8x32xf32>
    %67 = vector.broadcast %37 : vector<1x32xf32> to vector<8x32xf32>
    %68 = arith.mulf %66, %67 : vector<8x32xf32>
    %69 = vector.broadcast %38 : vector<1x32xf32> to vector<8x32xf32>
    %70 = arith.addf %68, %69 : vector<8x32xf32>
    %c0_31 = arith.constant 0 : index
    %c0_32 = arith.constant 0 : index
    %71 = vector.load %arg6[%c0_31, %c0_32] : memref<32x128xf32, #tpu.memory_space<vmem>>, vector<32x128xf32>
    %cst_33 = arith.constant dense<0.000000e+00> : vector<8x128xf32>
    %72 = tpu.matmul %70, %71, %cst_33 {dimension_numbers = #tpu.dot_dimension_numbers<[1], [0], [0], [1], [0, 0, 1, 1], [], []>} : vector<8x32xf32>, vector<32x128xf32>, vector<8x128xf32> -> vector<8x128xf32>
    %73 = vector.broadcast %35 : vector<1x128xf32> to vector<8x128xf32>
    %74 = arith.addf %72, %73 : vector<8x128xf32>
    %cst_34 = arith.constant 0.000000e+00 : f32
    %75 = vector.broadcast %cst_34 : f32 to vector<8x128xf32>
    %76 = arith.maximumf %74, %75 : vector<8x128xf32>
    %c0_35 = arith.constant 0 : index
    %c0_36 = arith.constant 0 : index
    %77 = vector.load %arg7[%c0_35, %c0_36] : memref<128x32xf32, #tpu.memory_space<vmem>>, vector<128x32xf32>
    %cst_37 = arith.constant dense<0.000000e+00> : vector<8x32xf32>
    %78 = tpu.matmul %76, %77, %cst_37 {dimension_numbers = #tpu.dot_dimension_numbers<[1], [0], [0], [1], [0, 0, 1, 1], [], []>} : vector<8x128xf32>, vector<128x32xf32>, vector<8x32xf32> -> vector<8x32xf32>
    %79 = vector.broadcast %41 : vector<1x32xf32> to vector<8x32xf32>
    %80 = arith.addf %78, %79 : vector<8x32xf32>
    %81 = arith.addf %80, %70 : vector<8x32xf32>
    %cst_38 = arith.constant dense<0.000000e+00> : vector<8xf32>
    %82 = vector.multi_reduction <add>, %81, %cst_38 [1] : vector<8x32xf32> to vector<8xf32>
    %83 = vector.shape_cast %82 : vector<8xf32> to vector<8x1xf32>
    %cst_39 = arith.constant 3.200000e+01 : f32
    %84 = vector.broadcast %cst_39 : f32 to vector<8x1xf32>
    %85 = arith.divf %83, %84 : vector<8x1xf32>
    %86 = vector.broadcast %85 : vector<8x1xf32> to vector<8x32xf32>
    %87 = arith.subf %81, %86 : vector<8x32xf32>
    %88 = arith.mulf %87, %87 : vector<8x32xf32>
    %cst_40 = arith.constant dense<0.000000e+00> : vector<8xf32>
    %89 = vector.multi_reduction <add>, %88, %cst_40 [1] : vector<8x32xf32> to vector<8xf32>
    %90 = vector.shape_cast %89 : vector<8xf32> to vector<8x1xf32>
    %cst_41 = arith.constant 3.200000e+01 : f32
    %91 = vector.broadcast %cst_41 : f32 to vector<8x1xf32>
    %92 = arith.divf %90, %91 : vector<8x1xf32>
    %93 = vector.broadcast %85 : vector<8x1xf32> to vector<8x32xf32>
    %94 = arith.subf %81, %93 : vector<8x32xf32>
    %cst_42 = arith.constant 9.99999974E-6 : f32
    %95 = vector.broadcast %cst_42 : f32 to vector<8x1xf32>
    %96 = arith.addf %92, %95 : vector<8x1xf32>
    %97 = math.rsqrt %96 : vector<8x1xf32>
    %98 = vector.broadcast %97 : vector<8x1xf32> to vector<8x32xf32>
    %99 = arith.mulf %94, %98 : vector<8x32xf32>
    %100 = vector.broadcast %39 : vector<1x32xf32> to vector<8x32xf32>
    %101 = arith.mulf %99, %100 : vector<8x32xf32>
    %102 = vector.broadcast %40 : vector<1x32xf32> to vector<8x32xf32>
    %103 = arith.addf %101, %102 : vector<8x32xf32>
    %c0_43 = arith.constant 0 : index
    %c0_44 = arith.constant 0 : index
    %c0_45 = arith.constant 0 : index
    %104 = vector.load %arg9[%c0_43, %c0_44, %c0_45] : memref<1x8x32xf32, #tpu.memory_space<vmem>>, vector<1x8x32xf32>
    %105 = vector.shape_cast %104 : vector<1x8x32xf32> to vector<8x32xf32>
    %106 = vector.shape_cast %103 : vector<8x32xf32> to vector<1x8x32xf32>
    tpu.vector_store %arg9[%c0_43, %c0_44, %c0_45], %106 {strides = array<i32>} : memref<1x8x32xf32, #tpu.memory_space<vmem>>, vector<1x8x32xf32>,
    return
  }
  func.func @transform_0(%arg0: i32) -> (i32, i32, i32) {
    %c0_i32 = arith.constant 0 : i32
    %c0_i32_0 = arith.constant 0 : i32
    %c0_i32_1 = arith.constant 0 : i32
    return %arg0, %c0_i32, %c0_i32_0 : i32, i32, i32
  }
  func.func @transform_1(%arg0: i32) -> (i32, i32, i32) {
    %c0_i32 = arith.constant 0 : i32
    %c0_i32_0 = arith.constant 0 : i32
    %c0_i32_1 = arith.constant 0 : i32
    return %arg0, %c0_i32, %c0_i32_0 : i32, i32, i32
  }
  func.func @transform_2(%arg0: i32) -> (i32, i32, i32) {
    %c0_i32 = arith.constant 0 : i32
    %c0_i32_0 = arith.constant 0 : i32
    %c0_i32_1 = arith.constant 0 : i32
    return %arg0, %c0_i32, %c0_i32_0 : i32, i32, i32
  }
  func.func @transform_3(%arg0: i32) -> (i32, i32) {
    %c0_i32 = arith.constant 0 : i32
    %c0_i32_0 = arith.constant 0 : i32
    %c0_i32_1 = arith.constant 0 : i32
    return %c0_i32, %c0_i32_0 : i32, i32
  }
  func.func @transform_4(%arg0: i32) -> (i32, i32) {
    %c0_i32 = arith.constant 0 : i32
    %c0_i32_0 = arith.constant 0 : i32
    %c0_i32_1 = arith.constant 0 : i32
    return %c0_i32, %c0_i32_0 : i32, i32
  }
  func.func @transform_5(%arg0: i32) -> (i32, i32) {
    %c0_i32 = arith.constant 0 : i32
    %c0_i32_0 = arith.constant 0 : i32
    %c0_i32_1 = arith.constant 0 : i32
    return %c0_i32, %c0_i32_0 : i32, i32
  }
  func.func @transform_6(%arg0: i32) -> (i32, i32) {
    %c0_i32 = arith.constant 0 : i32
    %c0_i32_0 = arith.constant 0 : i32
    %c0_i32_1 = arith.constant 0 : i32
    return %c0_i32, %c0_i32_0 : i32, i32
  }
  func.func @transform_7(%arg0: i32) -> (i32, i32) {
    %c0_i32 = arith.constant 0 : i32
    %c0_i32_0 = arith.constant 0 : i32
    %c0_i32_1 = arith.constant 0 : i32
    return %c0_i32, %c0_i32_0 : i32, i32
  }
  func.func @transform_8(%arg0: i32) -> (i32, i32, i32) {
    %c0_i32 = arith.constant 0 : i32
    %c0_i32_0 = arith.constant 0 : i32
    %c0_i32_1 = arith.constant 0 : i32
    return %arg0, %c0_i32, %c0_i32_0 : i32, i32, i32
  }
}

</mosaic_0001>

<bundles_post_ra>
// kernel: transformer_block.1
= control target key start
LH: loop header
LB: loop body
LE: loop exit
PB: predicated region body
PF: predicated region fallthrough
CT: control target
= control target key end

     0   :  { %13 = vsyncpa [#allocation4], 0  ;;  %s2261_s0 = inlined_call_operand.vmem [shape: f32[2,32,24], index: 0, kind: input, shape index: {}]   ;;  %s2262_s1 = inlined_call_operand.vmem [shape: f32[2,8,32], index: 1, kind: input, shape index: {}]   ;;  %s2263_s2 = inlined_call_operand.vmem [shape: f32[2,8,8], index: 2, kind: input, shape index: {}]   ;;  %s2264_s3 = inlined_call_operand.vmem [shape: f32[24,24], index: 3, kind: input, shape index: {}]   ;;  %s2265_s4 = inlined_call_operand.vmem [shape: f32[32,32], index: 4, kind: input, shape index: {}]   ;;  %s2266_s5 = inlined_call_operand.vmem [shape: f32[32,128], index: 5, kind: input, shape index: {}]   ;;  %s2267_s6 = inlined_call_operand.vmem [shape: f32[128,32], index: 6, kind: input, shape index: {}]   ;;  %s2268_s7 = inlined_call_operand.vmem [shape: f32[8,128], index: 7, kind: input, shape index: {}]   ;;  %s2269_s8 = inlined_call_operand.hbm [shape: f32[2,8,32], index: 8, kind: output, shape index: {}]  }
   0x1   :  { %15 = vsyncpa [#allocation4 + $0x1], 0  ;;  %s1947_s27 = smov 0   ;;  %s1949_s28 = smov 0  }
   0x2   :  { %s1951_s29 = smov 0   ;;  %s1953_s30 = smov 0  }
   0x3 LB: > { %s1968_s9 = sadd.s32 4294967295, %s1891_s30   ;;  %s1531_s10 = sadd.s32 4294967294, %s1891_s30   ;;  %s1891_s30 = sphi %s1953_s30, %s2275_s30   ;;  %s1887_s29 = sphi %s1951_s29, %s2274_s29   ;;  %s1883_s28 = sphi %s1949_s28, %s2273_s28   ;;  %s1879_s27 = sphi %s1947_s27, %s2272_s27  }
   0x4   : > { %s1972_s11 = sadd.s32 1, %s1891_s30   ;;  %s211_s12 = sadd.s32 1, %s1887_s29 }
   0x5   : > { %s208_s13 = ssub.s32 %s1891_s30, %s1972_s11  ;;  %p221_p0 = scmp.ne.s32.totalorder %s1887_s29, %s1883_s28 }
   0x6   : > { %p209_p1 = scmp.eq.s32.totalorder %s208_s13, 0  ;;  %p222_p2 = scmp.eq.s32.totalorder %s1968_s9, 1 }
   0x7   : > { %p227_p3 = scmp.ne.s32.totalorder %s1883_s28, %s1879_s27  ;;  %p228_p4 = scmp.eq.s32.totalorder %s1531_s10, 1 }
   0x8   : > { %s1983_s14 = scalar_select %p209_p1, %s1887_s29, %s211_s12  }
   0x9   : > { %p1985_p5 = por %p222_p2, %p221_p0  ;;  %p1989_p6 = por %p228_p4, %p227_p3 }
   0xa   : > { %p1534_p7 = scmp.ge.s32.totalorder %s1891_s30, 1  ;;  %p283_p8 = scmp.lt.s32.totalorder %s1891_s30, 3 }
   0xc   : > { %p284_p9 = pnand %p1534_p7, %p283_p8 }
   0xd   : > { %v342_v0 = vld [vmem:[%s2264_s3] sm:$0xff] (!%p284_p9)  ;;  %v343_v1 = vld [vmem:[%s2264_s3 + $0x8] sm:$0xff] (!%p284_p9)  ;;  %p325_p10 = scmp.lt.s32.totalorder (!%p284_p9), %s1968_s9, 1  ;;  %v344_v3 = vld [vmem:[%s2264_s3 + $0x10] sm:$0xff] (!%p284_p9)  ;;  %vm345_vm0 = vcmask (!%p284_p9), 195584   ;;  %v1893_v8 = vmov (!%p284_p9), 0.0  }
   0xe   : > { %287 = sbr.rel (%p284_p9) target bundleno = 2523 (0x9db), region = 52  ;;  %v1722_v2 = vpack.c.bf16 (!%p284_p9), %v343_v1, %v342_v0  ;;  %1635 = vmatprep.subr.mxu1 (!%p284_p9), %v1893_v8  ;;  %vm1894_vm1 = vmmov (!%p284_p9), 0   ;;  %s1895_s12 = smov (!%p284_p9), 120   ;;  %vm447_vm2 = vcmask (!%p284_p9), 64512   ;;  %vm1125_vm3 = vcmask (!%p284_p9), 130048  }
   0xf   : > { %1637 = vmatprep.mubr.msk.f32.mxu1 (!%p284_p9), %vm1894_vm1, %v1893_v8  ;;  %s1896_s20 = smov (!%p284_p9), 112   ;;  %s1898_s18 = smov (!%p284_p9), 16   ;;  %vm1137_vm4 = vcmask (!%p284_p9), 261120  }
  0x10   : > { %1723 = vmatprep.subr.bf16.mxu0 (!%p284_p9), %v1722_v2 }
  0x11   : > { %1725 = vmatpush3.bf16.msra.mxu0 (!%p284_p9), %v1722_v2 }
  0x12   : > { %1617 = vmatprep.subr.mxu0 (!%p284_p9), %v344_v3 }
  0x15   : > { %s2006_s23 = scalar_select %p325_p10, %s1968_s9, 1  ;;  %1618 = vmatpush3.msra.mxu0 %v344_v3 }
  0x16   : > { %1625 = vmatprep.subr.mxu0 %v1893_v8 }
  0x17   : > { %s1562_s24 = sshll.u32 %s2006_s23, 5  ;;  %s1538_s13 = sshll.u32 %s2006_s23, 3 }
  0x18   : > { %s329_s10 = scalar_lea.vmem %s2261_s0, %s1562_s24  ;;  %s337_s19 = scalar_lea.vmem %s2263_s2, %s1538_s13 }
  0x19   : > { %v338_v4 = vld [vmem:[%s329_s10] sm:$0xff]  ;;  %v339_v5 = vld [vmem:[%s329_s10 + $0x8] sm:$0xff]  ;;  %v340_v6 = vld [vmem:[%s329_s10 + $0x10] sm:$0xff]  ;;  %s333_s26 = scalar_lea.vmem %s2262_s1, %s1538_s13 }
  0x1a   : > { %1619 = vmatprep.mubr.msk.f32.mxu0 %vm345_vm0, %v338_v4  ;;  %v341_v7 = vld [vmem:[%s329_s10 + $0x18] sm:$0xff]  ;;  %v443_v17 = vld [vmem:[%s337_s19] sm:$0xff]  ;;  %s1899_s19 = smov 8   ;;  %s322_s10 = sand.u32 1, %s1883_s28  }
  0x1b   : > { %1620 = vmatmul.mubr.msk.f32.vlgmr.msra.gmra.mrb[0].mxu0 %vm345_vm0, %v339_v5  ;;  %s1535_s13 = sshll.u32 %s322_s10, 3  ;;  %s1435_s22 = scalar_lea.sflag [#allocation4], %s322_s10 }
  0x1c   : > { %1622 = vmatprep.mubr.msk.f32.mxu0 %vm345_vm0, %v340_v6  ;;  %v1129_v6 = vld [vmem:[%s2265_s4] sm:$0xff]  ;;  %s324_s17 = scalar_lea.vmem [#allocation3], %s1535_s13 }
  0x1f   : > { %1623 = vmatmul.mubr.msk.f32.gmra.mrb[2].mxu0 %vm345_vm0, %v341_v7  ;;  %v1130_v7 = vld [vmem:[%s2265_s4 + $0x8] sm:$0xff] }
  0x20   : > { %1627 = vmatprep.mubr.msk.f32.mxu0 %vm1894_vm1, %v1893_v8 }
  0xee   : > { %v2022_v9 = vpop.f32.mrb[0].mxu0 }
  0xef   : > { %v424_v10 = vpop.f32.mrb[1].mxu0 }
  0xf0   : > { %445 = vrot.lane.b32.xlu0 %v424_v10, %s1895_s12 }
  0xf2   : > { %v2024_v11 = vpop.f32.mrb[2].mxu0 }
  0xf3   : > { %v2026_v12 = vpop.f32.mrb[3].mxu0 }
  0xf4   : > { %523 = vrot.lane.b32.xlu0 %v2022_v9, %s1895_s12  ;;  %600 = vrot.lane.b32.xlu1 %v2026_v12, %s1895_s12 }
  0xf8   : > { %677 = vrot.lane.b32.xlu1 %v2024_v11, %s1895_s12  ;;  %s1559_s12 = sshll.u32 %s1968_s9, 7  ;;  %s1901_s9 = smov [#allocation3]  }
  0xf9   : > { %s2218_s21 = scalar_lea.hbm %s2269_s8, %s1559_s12  ;;  %s1833_s25 = sshll.u32 %s1901_s9, 4  ;;  %s1834_s25 = int_to_ptr.vmem [resolvable:$false] %s1833_s25 }
 0x162   : > { %v446_v13 = vpop.permute.xlu0 %445 }
 0x163   : > { %1626 = vmatpush3.xpose.msk.msra.mxu0 %vm447_vm2, %v446_v13 }
 0x164   : > { %1630 = vmatprep.subr.mxu0 %v1893_v8 }
 0x166   : > { %1628 = vmatmul.mubr.msk.f32.vlgmr.msra.gmra.mrb[4].mxu0 %vm447_vm2, %v424_v10  ;;  %v524_v14 = vpop.permute.xlu0 %523  ;;  %v601_v15 = vpop.permute.xlu1 %600 }
 0x167   : > { %1631 = vmatpush3.xpose.msk.msra.mxu0 %vm447_vm2, %v524_v14  ;;  %1636 = vmatpush3.xpose.msk.msra.mxu1 %vm447_vm2, %v601_v15 }
 0x168   : > { %1632 = vmatprep.mubr.msk.f32.mxu0 %vm1894_vm1, %v1893_v8  ;;  %1640 = vmatprep.subr.mxu0 %v1893_v8 }
 0x169   : > { %1645 = vmatprep.subr.mxu1 %v1893_v8 }
 0x16a   : > { %1633 = vmatmul.mubr.msk.f32.vlgmr.msra.gmra.mrb[6].mxu0 %vm447_vm2, %v2022_v9  ;;  %1638 = vmatmul.mubr.msk.f32.vlgmr.msra.gmra.mrb[0].mxu1 %vm447_vm2, %v2026_v12  ;;  %v678_v16 = vpop.permute.xlu1 %677 }
 0x16b   : > { %1641 = vmatpush3.xpose.msk.msra.mxu0 %vm447_vm2, %v678_v16  ;;  %1642 = vmatprep.mubr.msk.f32.mxu0 %vm1894_vm1, %v1893_v8  ;;  %v1131_v16 = vld [vmem:[%s2265_s4 + $0x10] sm:$0xff] }
 0x16c   : > { %1650 = vmatprep.subr.mxu0 %v1893_v8  ;;  %1647 = vmatprep.mubr.msk.f32.mxu1 %vm1894_vm1, %v1893_v8 }
 0x16e   : > { %1643 = vmatmul.mubr.msk.f32.vlgmr.msra.gmra.mrb[8].mxu0 %vm447_vm2, %v2024_v11 }
 0x16f   : > { %1652 = vmatprep.mubr.msk.f32.mxu0 %vm1894_vm1, %v1893_v8 }
 0x239   : > { %v518_v18 = vpop.f32.mrb[4].mxu0 }
 0x23a   : > { %v519_v19 = vadd.f32 %v518_v18, %v443_v17  ;;  %v1629_v20 = vpop.f32.mrb[5].mxu0 }
 0x23c   : > { %v753_v21 = vsel %vm447_vm2, %v519_v19, -inf }
 0x23d   : > { %v672_v22 = vpop.f32.mrb[0].mxu1  ;;  %754 = vmax.xlane.f32.xlu0 %v753_v21  ;;  %v595_v23 = vpop.f32.mrb[6].mxu0 }
 0x23e   : > { %v673_v24 = vadd.f32 %v672_v22, %v443_v17  ;;  %v596_v25 = vadd.f32 %v595_v23, %v443_v17  ;;  %v1634_v26 = vpop.f32.mrb[7].mxu0  ;;  %v1639_v27 = vpop.f32.mrb[1].mxu1 }
 0x240   : > { %v759_v28 = vsel %vm447_vm2, %v673_v24, -inf  ;;  %v756_v29 = vsel %vm447_vm2, %v596_v25, -inf }
 0x241   : > { %760 = vmax.xlane.f32.xlu0 %v759_v28  ;;  %757 = vmax.xlane.f32.xlu1 %v756_v29  ;;  %v749_v30 = vpop.f32.mrb[8].mxu0 }
 0x242   : > { %v750_v31 = vadd.f32 %v749_v30, %v443_v17  ;;  %v1644_v32 = vpop.f32.mrb[9].mxu0  ;;  %v1132_v17 = vld [vmem:[%s2265_s4 + $0x18] sm:$0xff] }
 0x243   : > { %v1133_v32 = vlaneseq }
 0x244   : > { %v762_v33 = vsel %vm447_vm2, %v750_v31, -inf }
 0x245   : > { %763 = vmax.xlane.f32.xlu0 %v762_v33  ;;  %v2114_v33 = vshrl.u32 %v1133_v32, 7 }
 0x252   : > { %797 = vrot.lane.b32.xlu1 %v424_v10, %s1896_s20  ;;  %v1727_v10 = vpack.c.bf16 %v1130_v7, %v1129_v6  ;;  %v1331_v7 = vld [vmem:[%s2267_s6 + $0x60] sm:$0xff] }
 0x2ca   : > { %v755_v34 = vpop.xlane.xlu0 %754 }
 0x2cb   : > { %v765_v35 = vsub.f32 %v519_v19, %v755_v34  ;;  %v1730_v19 = vpack.c.bf16 %v1132_v17, %v1131_v16  ;;  %v1135_v34 = vsub.s32 1, %v2114_v33  ;;  %v1234_v16 = vsub.s32 3, %v2114_v33 }
 0x2cd   : > { %v769_v36 = vmul.f32 1.442695, %v765_v35  ;;  %v2120_v35 = vld [vmem:[%s2268_s7] sm:$0xff] }
 0x2ce   : > { %v761_v37 = vpop.xlane.xlu0 %760  ;;  %v758_v38 = vpop.xlane.xlu1 %757 }
 0x2cf   : > { %1809 = vpow2.f32 %v769_v36  ;;  %v767_v39 = vsub.f32 %v673_v24, %v761_v37  ;;  %v766_v40 = vsub.f32 %v596_v25, %v758_v38  ;;  %v1136_v36 = vrot.slane %v2120_v35, %v1135_v34  ;;  %v1211_v38 = vld [vmem:[%s333_s26] sm:$0xff]  ;;  %s1835_s26 = scalar_lea.vmem %s1834_s25, 256 }
 0x2d1   : > { %v773_v41 = vmul.f32 1.442695, %v767_v39  ;;  %v771_v42 = vmul.f32 1.442695, %v766_v40 }
 0x2d2   : > { %v798_v43 = vpop.permute.xlu1 %797  ;;  %v764_v44 = vpop.xlane.xlu0 %763 }
 0x2d3   : > { %1811 = vpow2.f32 %v773_v41  ;;  %v768_v45 = vsub.f32 %v750_v31, %v764_v44  ;;  %1646 = vmatpush3.msra.mxu1 %v798_v43 }
 0x2d4   : > { %1813 = vpow2.f32 %v771_v42  ;;  %1655 = vmatprep.subr.mxu1 %v1893_v8 }
 0x2d5   : > { %v775_v46 = vmul.f32 1.442695, %v768_v45 }
 0x2d7   : > { %1815 = vpow2.f32 %v775_v46 }
 0x2d9   : > { %v1810_v47 = vpop.eup %1809 }
 0x2da   : > { %v777_v48 = vsel %vm447_vm2, %v1810_v47, 0.0 }
 0x2db   : > { %778 = vadd.xlane.f32.xlu1 %v777_v48  ;;  %v1238_v48 = vld [vmem:[%s2266_s5 + $0x8] sm:$0xff] }
 0x2dd   : > { %v1812_v49 = vpop.eup %1811 }
 0x2de   : > { %v1814_v50 = vpop.eup %1813  ;;  %v783_v51 = vsel %vm447_vm2, %v1812_v49, 0.0 }
 0x2df   : > { %784 = vadd.xlane.f32.xlu1 %v783_v51  ;;  %v780_v52 = vsel %vm447_vm2, %v1814_v50, 0.0  ;;  %v1240_v51 = vld [vmem:[%s2266_s5 + $0x18] sm:$0xff] }
 0x2e0   : > { %781 = vadd.xlane.f32.xlu0 %v780_v52 }
 0x2e1   : > { %v1816_v53 = vpop.eup %1815 }
 0x2e2   : > { %v786_v54 = vsel %vm447_vm2, %v1816_v53, 0.0 }
 0x2e4   : > { %787 = vadd.xlane.f32.xlu0 %v786_v54  ;;  %v1320_v54 = vld [vmem:[%s2267_s6 + $0x8] sm:$0xff] }
 0x2f0   : > { %949 = vrot.lane.b32.xlu1 %v2026_v12, %s1896_s20 }
 0x2f4   : > { %1025 = vrot.lane.b32.xlu1 %v2024_v11, %s1896_s20 }
 0x2fa   : > { %873 = vrot.lane.b32.xlu0 %v2022_v9, %s1896_s20  ;;  %v1897_v9 = vmov 0.0|0.0   ;;  %s1900_s20 = smov 24  }
 0x368   : > { %v779_v55 = vpop.xlane.xlu1 %778 }
 0x369   : > { %1817 = vrcp.f32 %v779_v55  ;;  %v1321_v55 = vld [vmem:[%s2267_s6 + $0x10] sm:$0xff] }
 0x36c   : > { %v785_v56 = vpop.xlane.xlu1 %784 }
 0x36d   : > { %1819 = vrcp.f32 %v785_v56  ;;  %v782_v57 = vpop.xlane.xlu0 %781 }
 0x36e   : > { %1821 = vrcp.f32 %v782_v57  ;;  %v1322_v57 = vld [vmem:[%s2267_s6 + $0x18] sm:$0xff] }
 0x370   : > { %v950_v61 = vpop.permute.xlu1 %949 }
 0x371   : > { %v788_v58 = vpop.xlane.xlu0 %787 }
 0x372   : > { %1823 = vrcp.f32 %v788_v58  ;;  %v1742_v58 = vpack.c.bf16 %v1322_v57, %v1321_v55 }
 0x373   : > { %v1818_v59 = vpop.eup %1817 }
 0x374   : > { %v793_v60 = vmul.f32 %v1818_v59, %v1810_v47  ;;  %v1026_v3 = vpop.permute.xlu1 %1025  ;;  %v1237_v47 = vld [vmem:[%s2266_s5] sm:$0xff] }
 0x375   : > { %v874_v62 = vpop.permute.xlu0 %873  ;;  %v1323_v59 = vld [vmem:[%s2267_s6 + $0x20] sm:$0xff] }
 0x376   : > { %1651 = vmatpush3.msra.mxu0 %v874_v62  ;;  %1648 = vmatmul.mubr.msk.f32.vlgmr.msra.gmra.mrb[2].mxu1 %vm447_vm2, %v793_v60  ;;  %v1324_v60 = vld [vmem:[%s2267_s6 + $0x28] sm:$0xff]  ;;  %v1325_v62 = vld [vmem:[%s2267_s6 + $0x30] sm:$0xff] }
 0x377   : > { %v1820_v63 = vpop.eup %1819  ;;  %1656 = vmatpush3.msra.mxu1 %v950_v61  ;;  %1657 = vmatprep.mubr.msk.f32.mxu1 %vm1894_vm1, %v1893_v8  ;;  %v1745_v61 = vpack.c.bf16 %v1324_v60, %v1323_v59 }
 0x378   : > { %v1822_v0 = vpop.eup %1821  ;;  %v795_v1 = vmul.f32 %v1820_v63, %v1812_v49  ;;  %1660 = vmatprep.subr.mxu0 %v1893_v8  ;;  %1738 = vmatprep.subr.bf16.mxu1 %v1897_v9  ;;  %v1733_v49 = vpack.c.bf16 %v1238_v48, %v1237_v47  ;;  %v1326_v63 = vld [vmem:[%s2267_s6 + $0x38] sm:$0xff]  ;;  %v1425_v47 = vsub.s32 4, %v2114_v33  ;;  %v1430_v48 = vsub.s32 5, %v2114_v33 }
 0x379   : > { %v794_v2 = vmul.f32 %v1822_v0, %v1814_v50  ;;  %v1239_v50 = vld [vmem:[%s2266_s5 + $0x10] sm:$0xff]  ;;  %v1748_v0 = vpack.c.bf16 %v1326_v63, %v1325_v62 }
 0x37a   : > { %1658 = vmatmul.mubr.msk.f32.vlgmr.msra.gmra.mrb[4].mxu1 %vm447_vm2, %v795_v1  ;;  %v1736_v52 = vpack.c.bf16 %v1240_v51, %v1239_v50  ;;  %v1327_v1 = vld [vmem:[%s2267_s6 + $0x40] sm:$0xff] }
 0x37b   : > { %1653 = vmatmul.mubr.msk.f32.vlgmr.msra.gmra.mrb[10].mxu0 %vm447_vm2, %v794_v2  ;;  %1719 = vmatprep.mubr.msk.f32.mxu1 %vm1894_vm1, %v1893_v8  ;;  %v1328_v2 = vld [vmem:[%s2267_s6 + $0x48] sm:$0xff] }
 0x37c   : > { %v1824_v4 = vpop.eup %1823  ;;  %1661 = vmatpush3.msra.mxu0 %v1026_v3  ;;  %1662 = vmatprep.mubr.msk.f32.mxu0 %vm1894_vm1, %v1893_v8  ;;  %v1751_v3 = vpack.c.bf16 %v1328_v2, %v1327_v1 }
 0x37d   : > { %v796_v5 = vmul.f32 %v1824_v4, %v1816_v53  ;;  %1726 = vmatprep.subr.bf16.mxu0 %v1897_v9  ;;  %v1319_v53 = vld [vmem:[%s2267_s6] sm:$0xff]  ;;  %v1329_v4 = vld [vmem:[%s2267_s6 + $0x50] sm:$0xff] }
 0x37e   : > { %v1739_v56 = vpack.c.bf16 %v1320_v54, %v1319_v53 }
 0x37f   : > { %1663 = vmatmul.mubr.msk.f32.vlgmr.msra.gmra.mrb[12].mxu0 %vm447_vm2, %v796_v5  ;;  %v1330_v5 = vld [vmem:[%s2267_s6 + $0x58] sm:$0xff] }
 0x380   : > { %1673 = vmatprep.mubr.msk.f32.mxu0 %vm1894_vm1, %v1893_v8  ;;  %1728 = vmatpush3.bf16.msra.mxu0 %v1727_v10  ;;  %v1754_v6 = vpack.c.bf16 %v1330_v5, %v1329_v4  ;;  %v1332_v10 = vld [vmem:[%s2267_s6 + $0x68] sm:$0xff] }
 0x381   : > { %1729 = vmatprep.subr.bf16.mxu0 %v1897_v9  ;;  %1740 = vmatpush3.bf16.msra.mxu1 %v1739_v56 }
 0x382   : > { %1741 = vmatprep.subr.bf16.mxu1 %v1897_v9 }
 0x384   : > { %1731 = vmatpush3.bf16.msra.mxu0 %v1730_v19 }
 0x385   : > { %1732 = vmatprep.subr.bf16.mxu0 %v1897_v9  ;;  %1743 = vmatpush3.bf16.msra.mxu1 %v1742_v58 }
 0x386   : > { %1744 = vmatprep.subr.bf16.mxu1 %v1897_v9 }
 0x389   : > { %1746 = vmatpush3.bf16.msra.mxu1 %v1745_v61 }
 0x38a   : > { %1747 = vmatprep.subr.bf16.mxu1 %v1897_v9 }
 0x38d   : > { %1749 = vmatpush3.bf16.msra.mxu1 %v1748_v0 }
 0x38e   : > { %1750 = vmatprep.subr.bf16.mxu1 %v1897_v9 }
 0x391   : > { %1752 = vmatpush3.bf16.msra.mxu1 %v1751_v3 }
 0x392   : > { %1753 = vmatprep.subr.bf16.mxu1 %v1897_v9 }
 0x395   : > { %1755 = vmatpush3.bf16.msra.mxu1 %v1754_v6 }
 0x396   : > { %1756 = vmatprep.subr.bf16.mxu1 %v1897_v9 }
 0x449   : > { %v869_v11 = vpop.f32.mrb[2].mxu1 }
 0x44a   : > { %1101 = vst.msk [vmem:[#allocation2] sm:$0xff] %vm447_vm2, %v869_v11  ;;  %v1649_v12 = vpop.f32.mrb[3].mxu1  ;;  %v1757_v11 = vpack.c.bf16 %v1332_v10, %v1331_v7 }
 0x44c   : > { %1758 = vmatpush3.bf16.msra.mxu1 %v1757_v11 }
 0x44d   : > { %v1021_v13 = vpop.f32.mrb[4].mxu1  ;;  %1759 = vmatprep.subr.bf16.mxu1 %v1897_v9 }
 0x44e   : > { %v945_v14 = vpop.f32.mrb[10].mxu0  ;;  %1103 = vst.msk [vmem:[#allocation2 + $0x10] sm:$0xff] %vm447_vm2, %v1021_v13  ;;  %v1659_v15 = vpop.f32.mrb[5].mxu1 }
 0x44f   : > { %1102 = vst.msk [vmem:[#allocation2 + $0x8] sm:$0xff] %vm447_vm2, %v945_v14  ;;  %v1654_v18 = vpop.f32.mrb[11].mxu0  ;;  %v1229_v15 = vsub.s32 2, %v2114_v33 }
 0x451   : > { %v1230_v17 = vrot.slane %v2120_v35, %v1229_v15 }
 0x452   : > { %v1097_v20 = vpop.f32.mrb[12].mxu0 }
 0x453   : > { %1104 = vst.msk [vmem:[#allocation2 + $0x18] sm:$0xff] %vm447_vm2, %v1097_v20  ;;  %v1664_v21 = vpop.f32.mrb[13].mxu0  ;;  %v1235_v20 = vrot.slane %v2120_v35, %v1234_v16 }
 0x45a   : > { %v1109_v22 = vld [vmem:[#allocation2 + $0x2] ss:$4 sm:$0xff]  ;;  %v1107_v23 = vld [vmem:[#allocation2 + $0x1] ss:$4 sm:$0xff]  ;;  %v1111_v24 = vld [vmem:[#allocation2 + $0x3] ss:$4 sm:$0xff] }
 0x45b   : > { %1117 = vrot.lane.b32.xlu1 %v1109_v22, %s1898_s18  ;;  %1113 = vrot.lane.b32.xlu0 %v1107_v23, %s1899_s19  ;;  %v1105_v26 = vld [vmem:[#allocation2] ss:$4 sm:$0xff]  ;;  %s1448_s18 = sshll.u32 %s324_s17, 4  ;;  %s2220_s18 = int_to_ptr.vmem [resolvable:$true] %s1448_s18 }
 0x45c   : > { %v1334_v23 = vld [vmem:[%s2267_s6 + $0x78] sm:$0xff]  ;;  %s1829_s24 = scalar_lea.vmem %s2220_s18, 128  ;;  %p1836_p0 = scmp.lt.s32.totalorder %s2220_s18, %s1834_s25 }
 0x45d   : > { %p1830_p11 = scmp.ne.s32.totalorder %s2220_s18, %s1829_s24  ;;  %p1837_p1 = scmp.lt.s32.totalorder %s1835_s26, %s1829_s24 }
 0x45f   : > { %1121 = vrot.lane.b32.xlu0 %v1111_v24, %s1900_s20  ;;  %p1831_p12 = pnand %p1830_p11, %p1985_p5  ;;  %p1838_p2 = por %p1837_p1, %p1836_p0 }
 0x461   : > { %p1832_p13 = pneg %p1831_p12 }
 0x463   : > { %p1839_p3 = pnand %p1838_p2, %p1832_p13 }
 0x4cd   : > { %v1114_v25 = vpop.permute.xlu0 %1113  ;;  %v1118_v27 = vpop.permute.xlu1 %1117 }
 0x4ce   : > { %v1124_v28 = vsel %vm447_vm2, %v1105_v26, %v1114_v25  ;;  %v1243_v25 = vsub.s32 0, %v2114_v33 }
 0x4cf   : > { %v1126_v30 = vsel %vm1125_vm3, %v1124_v28, %v1118_v27 }
 0x4d0   : > { %v1244_v26 = vrot.slane %v2120_v35, %v1243_v25 }
 0x4d1   : > { %v1122_v29 = vpop.permute.xlu0 %1121 }
 0x4d2   : > { %v1127_v31 = vsel %vm345_vm0, %v1126_v30, %v1122_v29 }
 0x4d3   : > { %1674 = vmatmul.mubr.msk.f32.vlgmr.msra.gmra.mrb[14].mxu0 %vm1137_vm4, %v1127_v31  ;;  %v1337_v31 = vsub.s32 6, %v2114_v33 }
 0x4d4   : > { %1684 = vmatprep.mubr.msk.f32.mxu0 %vm1894_vm1, %v1893_v8  ;;  %1734 = vmatpush3.bf16.msra.mxu0 %v1733_v49  ;;  %v1426_v49 = vrot.slane %v2120_v35, %v1425_v47 }
 0x4d5   : > { %1735 = vmatprep.subr.bf16.mxu0 %v1897_v9  ;;  %v1333_v9 = vld [vmem:[%s2267_s6 + $0x70] sm:$0xff]  ;;  %v1338_v32 = vrot.slane %v2120_v35, %v1337_v31 }
 0x4d6   : > { %v1760_v24 = vpack.c.bf16 %v1334_v23, %v1333_v9 }
 0x4d8   : > { %1737 = vmatpush3.bf16.msra.mxu0 %v1736_v52  ;;  %1761 = vmatpush3.bf16.msra.mxu1 %v1760_v24  ;;  %v1431_v52 = vrot.slane %v2120_v35, %v1430_v48 }
 0x5a6   : > { %v1207_v37 = vpop.f32.mrb[14].mxu0 }
 0x5a7   : > { %v1208_v8 = vadd.f32 %v1207_v37, %v1136_v36  ;;  %v1675_v39 = vpop.f32.mrb[15].mxu0 }
 0x5a9   : > { %v1212_v40 = vadd.f32 %v1211_v38, %v1208_v8 }
 0x5ab   : > { %v1213_v41 = vsel %vm1137_vm4, %v1212_v40, 0.0 }
 0x5ac   : > { %1214 = vadd.xlane.f32.xlu1 %v1213_v41 }
 0x639   : > { %v1215_v42 = vpop.xlane.xlu1 %1214 }
 0x63a   : > { %v1217_v43 = vmul.f32 0.03125, %v1215_v42 }
 0x63c   : > { %v1218_v44 = vsub.f32 %v1212_v40, %v1217_v43 }
 0x63e   : > { %v1219_v45 = vmul.f32 %v1218_v44, %v1218_v44 }
 0x640   : > { %v1220_v46 = vsel %vm1137_vm4, %v1219_v45, 0.0 }
 0x641   : > { %1221 = vadd.xlane.f32.xlu0 %v1220_v46 }
 0x6ce   : > { %v1222_v12 = vpop.xlane.xlu0 %1221 }
 0x6cf   : > { %v1223_v13 = vmul.f32 0.03125, %v1222_v12 }
 0x6d1   : > { %v1224_v14 = vadd.f32 1e-05, %v1223_v13 }
 0x6d3   : > { %1825 = vrsqrt.f32 %v1224_v14 }
 0x6dd   : > { %v1826_v18 = vpop.eup %1825 }
 0x6de   : > { %v1226_v19 = vmul.f32 %v1826_v18, %v1218_v44 }
 0x6e0   : > { %v1231_v21 = vmul.f32 %v1230_v17, %v1226_v19 }
 0x6e2   : > { %v1236_v22 = vadd.f32 %v1235_v20, %v1231_v21 }
 0x6e4   : > { %1685 = vmatmul.mubr.msk.f32.vlgmr.msra.gmra.mrb[16].mxu0 %vm1137_vm4, %v1236_v22 }
 0x7b7   : > { %v1314_v27 = vpop.f32.mrb[16].mxu0 }
 0x7b8   : > { %v1315_v28 = vadd.f32 %v1314_v27, %v1244_v26  ;;  %v1686_v29 = vpop.f32.mrb[17].mxu0 }
 0x7ba   : > { %v1318_v30 = vmax.f32 %v1315_v28, 0.0 }
 0x7bc   : > { %1720 = vmatmul.mubr.f32.vlgmr.msra.gmra.mrb[6].mxu1 %v1318_v30 }
 0x88f   : > { %v1405_v34 = vpop.f32.mrb[6].mxu1 }
 0x890   : > { %v1406_v36 = vadd.f32 %v1405_v34, %v1338_v32  ;;  %v1721_v37 = vpop.f32.mrb[7].mxu1 }
 0x892   : > { %v1409_v38 = vadd.f32 %v1406_v36, %v1236_v22 }
 0x894   : > { %v1410_v8 = vsel %vm1137_vm4, %v1409_v38, 0.0 }
 0x895   : > { %1411 = vadd.xlane.f32.xlu0 %v1410_v8 }
 0x922   : > { %v1412_v39 = vpop.xlane.xlu0 %1411 }
 0x923   : > { %v1413_v40 = vmul.f32 0.03125, %v1412_v39 }
 0x925   : > { %v1414_v41 = vsub.f32 %v1409_v38, %v1413_v40 }
 0x927   : > { %v1415_v42 = vmul.f32 %v1414_v41, %v1414_v41 }
 0x929   : > { %v1416_v43 = vsel %vm1137_vm4, %v1415_v42, 0.0 }
 0x92a   : > { %1417 = vadd.xlane.f32.xlu1 %v1416_v43 }
 0x9b7   : > { %v1418_v44 = vpop.xlane.xlu1 %1417 }
 0x9b8   : > { %v1419_v45 = vmul.f32 0.03125, %v1418_v44 }
 0x9ba   : > { %v1420_v46 = vadd.f32 1e-05, %v1419_v45 }
 0x9bc   : > { %1827 = vrsqrt.f32 %v1420_v46 }
 0x9c6   : > { %v1828_v50 = vpop.eup %1827 }
 0x9c7   : > { %v1422_v51 = vmul.f32 %v1828_v50, %v1414_v41 }
 0x9c9   : > { %v1427_v53 = vmul.f32 %v1426_v49, %v1422_v51 }
 0x9cb   : > { %v1432_v54 = vadd.f32 %v1431_v52, %v1427_v53 }
 0x9cd   : > { %1433 = vst.msk [vmem:[%s324_s17] sm:$0xff] %vm1137_vm4, %v1432_v54 }
 0x9ce   : > { %1842 = shalt.err (!%p1839_p3)
}
 0x9cf   : > { %s1843_s23 = scalar_lea.hbm %s2218_s21, 128  ;;  %s1847_s12 = scalar_lea.hbm %s2269_s8, 256 }
 0x9d0   : > { %p1844_p4 = scmp.ne.s32.totalorder %s2218_s21, %s1843_s23  ;;  %p1848_p9 = scmp.lt.u32.totalorder %s2218_s21, %s2269_s8 }
 0x9d1   : > { %p1849_p10 = scmp.lt.u32.totalorder %s1847_s12, %s1843_s23  ;;  %p1851_p12 = scmp.lt.u32.totalorder %s1843_s23, %s2218_s21 }
 0x9d2   : > { %p1845_p7 = pnand %p1844_p4, %p1985_p5 }
 0x9d3   : > { %p1850_p11 = por %p1849_p10, %p1848_p9 }
 0x9d4   : > { %p1846_p8 = pneg %p1845_p7 }
 0x9d5   : > { %p1852_p13 = por %p1851_p12, %p1850_p11 }
 0x9d7   : > { %p1853_p0 = pnand %p1852_p13, %p1846_p8 }
 0x9d9   : > { %1856 = shalt.err (!%p1853_p0)
}
 0x9da   : > { %1762 = dma.vmem_to_hbm [thread:$0]  (%p1985_p5), %s2220_s18, 128, %s2218_s21, %s1435_s22  }
 0x9db PF: > { %p1768_p1 = scmp.ge.s32.totalorder %s1891_s30, 2  ;;  %s1460_s20 = sand.u32 1, %s1879_s27  }
 0x9dc   : > { %s1461_s24 = scalar_lea.sflag [#allocation4], %s1460_s20 }
 0x9dd   : > { %p1765_p2 = pnand %p1768_p1, %p1989_p6 }
 0x9df   : > { %1874 = dma.done.wait (!%p1765_p2), %s1461_s24, 128  }
 0x9e0   : > { %1876 = vsyncadd (!%p1765_p2), %s1461_s24, 4294967168  ;;  %p18_p3 = scmp.ge.s32.totalorder %s1972_s11, 4   ;;  %s2272_s27 = smov %s1883_s28 }
 0x9e1   : > { %s2273_s28 = smov %s1887_s29  ;;  %s2274_s29 = smov %s1983_s14 }
 0x9e2   : > { %s2275_s30 = smov %s1972_s11  ;;  %20 = sbr.rel (!%p18_p3) target bundleno = 3 (0x3), region = 96 }
 0x9e9   :  { %1466 = vsyncpa [#allocation4], 1 }
 0x9ea   :  { %1468 = vsyncpa [#allocation4 + $0x1], 1 }

</bundles_post_ra>
